<compile_context>
chip_gen: v5e
topology: v5e:2x2
jax: 0.10.0
libtpu: 0.0.40
codegen_flags: <defaults>
</compile_context>

<pallas_src>
import functools
from typing import NamedTuple, Optional

import jax
import jax.numpy as jnp
from jax.experimental import pallas as pl
from jax.experimental.pallas import tpu as pltpu


def _round_up(x: int, m: int) -> int:
    return ((x + m - 1) // m) * m


def _sublane(dtype) -> int:
    # Sublane packing of the second-to-last dim per dtype width.
    return {4: 8, 2: 16, 1: 32}.get(jnp.dtype(dtype).itemsize, 8)


def _apply_act(acc, act: str, approx_gelu: bool):
    if act == "relu":
        return jnp.maximum(acc, 0.0)
    if act == "gelu":
        # approx_gelu=True (tanh form) runs on the otherwise-idle EUP slot and
        # is cheaper, esp. on v5e; default False for exact torch.nn.GELU parity.
        return jax.nn.gelu(acc, approximate=approx_gelu)
    if act == "sigmoid":
        return jax.nn.sigmoid(acc)
    if act in (None, "none", "identity"):
        return acc
    raise ValueError(f"unknown activation: {act}")


class Plan(NamedTuple):
    B: int
    N: int
    K: int
    tm: int
    tn: int
    tk: int
    Mp: int
    Np: int
    Kp: int
    single_k: bool


def make_plan(B: int, N: int, K: int, dtype=jnp.float32, *,
              tm_max: int = 512, tn_max: int = 1024, tk_max: int = 1024,
              vmem_budget_bytes: int = 40 * 1024 * 1024) -> Plan:
    """Pick tiles: lane-dense (128-mult) N/K, sublane-packed M, VMEM-budgeted."""
    itemsize = jnp.dtype(dtype).itemsize
    sub = _sublane(dtype)

    tm = min(_round_up(B, sub), tm_max)
    tk = min(_round_up(K, 128), tk_max)
    tn = min(_round_up(N, 128), tn_max)

    # v7x has 2 TensorCores: if the batch fits in a single M tile, make sure
    # there are at least two N tiles so both cores get a "parallel" block.
    Nr = _round_up(N, 128)
    if B <= tm and Nr // tn <= 1 and Nr >= 256:
        tn = _round_up((Nr + 1) // 2, 128)

    def footprint(tm_, tn_, tk_, single_k_):
        f = 2 * (tm_ * tk_ + tk_ * tn_ + tm_ * tn_) * itemsize  # dbl-buffered tiles
        f += 2 * tn_ * itemsize                                  # bias tile
        if not single_k_:
            f += tm_ * tn_ * 4                                   # resident f32 acc
        return f

    # Shrink (rarely triggered with these caps) to stay inside the budget,
    # which itself is chosen against v7x's 64 MiB per-TC VMEM.
    while footprint(tm, tn, tk, _round_up(K, tk) == tk) > vmem_budget_bytes:
        if tn > 256:
            tn = _round_up(tn // 2, 128)
        elif tk > 256:
            tk = _round_up(tk // 2, 128)
        elif tm > sub:
            tm = max(sub, _round_up(tm // 2, sub))
        else:
            break

    Mp, Np, Kp = _round_up(B, tm), _round_up(N, tn), _round_up(K, tk)
    return Plan(B, N, K, tm, tn, tk, Mp, Np, Kp, single_k=(Kp == tk))


def prepare_weight(weight, plan: Plan):
    """One-time prep: (N, K) torch layout -> zero-padded (Kp, Np).

    Zero K-padding keeps the matmul exact; the transpose happens once at init
    instead of a per-tile/per-call cost.
    """
    N, K = weight.shape
    wt = weight.T
    pk, pn = plan.Kp - K, plan.Np - N
    if pk or pn:
        wt = jnp.pad(wt, ((0, pk), (0, pn)))
    return wt


def prepare_bias(bias, plan: Plan):
    if bias is None:
        return None
    pn = plan.Np - bias.shape[0]
    b = jnp.pad(bias, (0, pn)) if pn else bias
    return b.reshape(1, plan.Np)


def _fused_kernel(*refs, act: str, use_bias: bool, approx_gelu: bool):
    """Single-K-block path: no accumulator, no reduction axis."""
    if use_bias:
        x_ref, w_ref, b_ref, o_ref = refs
    else:
        x_ref, w_ref, o_ref = refs
        b_ref = None
    acc = jnp.dot(x_ref[...], w_ref[...], preferred_element_type=jnp.float32)
    if use_bias:
        acc = acc + b_ref[...].astype(jnp.float32)
    o_ref[...] = _apply_act(acc, act, approx_gelu).astype(o_ref.dtype)


def _reduction_kernel(*refs, act: str, use_bias: bool, approx_gelu: bool):
    """General path: (M, N, K) grid, K innermost, resident f32 accumulator."""
    if use_bias:
        x_ref, w_ref, b_ref, o_ref, acc_ref = refs
    else:
        x_ref, w_ref, o_ref, acc_ref = refs
        b_ref = None

    k = pl.program_id(2)
    prod = jnp.dot(x_ref[...], w_ref[...], preferred_element_type=jnp.float32)

    @pl.when(k == 0)
    def _first():
        acc_ref[...] = prod          # direct store: no zero-fill + RMW on step 0

    @pl.when(k > 0)
    def _accum():
        acc_ref[...] += prod

    @pl.when(k == pl.num_programs(2) - 1)
    def _epilogue():
        acc = acc_ref[...]
        if use_bias:
            acc = acc + b_ref[...].astype(jnp.float32)
        o_ref[...] = _apply_act(acc, act, approx_gelu).astype(o_ref.dtype)


def linear_act_apply(x, w_t, bias_row, plan: Plan, act: str = "relu",
                     approx_gelu: bool = False):
    """y = act(x @ W^T + b) with pre-prepared (Kp, Np) weight and (1, Np) bias."""
    B, K = x.shape
    assert (B, K) == (plan.B, plan.K), "x shape does not match plan"
    assert w_t.shape == (plan.Kp, plan.Np), "weight not prepared for this plan"
    use_bias = bias_row is not None
    dtype = x.dtype
    itemsize = jnp.dtype(dtype).itemsize
    tm, tn, tk = plan.tm, plan.tn, plan.tk
    Mp, Np, Kp = plan.Mp, plan.Np, plan.Kp

    # Padding the activations is cheap relative to the (pre-padded) weight.
    if (Mp, Kp) != (B, K):
        x = jnp.pad(x, ((0, Mp - B), (0, Kp - K)))

    cost = pl.CostEstimate(
        flops=int(2 * Mp * Np * Kp),
        transcendentals=int(Mp * Np) if act in ("gelu", "sigmoid") else 0,
        bytes_accessed=int((Mp * Kp + Kp * Np + Mp * Np) * itemsize
                           + (Np * itemsize if use_bias else 0)),
    )

    if plan.single_k:
        grid = (Mp // tm, Np // tn)
        in_specs = [
            pl.BlockSpec((tm, tk), lambda i, j: (i, 0)),   # activations
            pl.BlockSpec((tk, tn), lambda i, j: (0, j)),   # pre-transposed weight
        ]
        operands = [x, w_t]
        if use_bias:
            in_specs.append(pl.BlockSpec((1, tn), lambda i, j: (0, j)))
            operands.append(bias_row)
        out_spec = pl.BlockSpec((tm, tn), lambda i, j: (i, j))
        scratch = []
        kernel = functools.partial(_fused_kernel, act=act, use_bias=use_bias,
                                   approx_gelu=approx_gelu)
        semantics = ("parallel", "parallel")
    else:
        grid = (Mp // tm, Np // tn, Kp // tk)
        in_specs = [
            pl.BlockSpec((tm, tk), lambda i, j, k: (i, k)),
            pl.BlockSpec((tk, tn), lambda i, j, k: (k, j)),
        ]
        operands = [x, w_t]
        if use_bias:
            in_specs.append(pl.BlockSpec((1, tn), lambda i, j, k: (0, j)))
            operands.append(bias_row)
        out_spec = pl.BlockSpec((tm, tn), lambda i, j, k: (i, j))
        scratch = [pltpu.VMEM((tm, tn), jnp.float32)]
        kernel = functools.partial(_reduction_kernel, act=act, use_bias=use_bias,
                                   approx_gelu=approx_gelu)
        semantics = ("parallel", "parallel", "arbitrary")

    out = pl.pallas_call(
        kernel,
        out_shape=jax.ShapeDtypeStruct((Mp, Np), dtype),
        grid_spec=pltpu.PrefetchScalarGridSpec(
            num_scalar_prefetch=0,
            grid=grid,
            in_specs=in_specs,
            out_specs=out_spec,
            scratch_shapes=scratch,
        ),
        compiler_params=pltpu.CompilerParams(
            dimension_semantics=semantics,
            # Raised so v5e's 16 MiB scoped default doesn't reject the larger
            # tiles; stays comfortably inside v7x's 64 MiB per-TC physical VMEM.
            vmem_limit_bytes=48 * 1024 * 1024,
        ),
        cost_estimate=cost,
    )(*operands)

    if (Mp, Np) != (plan.B, plan.N):
        out = out[:plan.B, :plan.N]
    return out


def linear_act(x, weight, bias=None, act: str = "relu", approx_gelu: bool = False):
    """One-shot convenience wrapper: y = act(x @ weight.T + bias).

    For repeated use (a real model), build the plan and prepared weight/bias
    ONCE via make_plan / prepare_weight / prepare_bias and call
    linear_act_apply so the weight transpose + pad is not paid per call.
    """
    B, K = x.shape
    N, K2 = weight.shape
    assert K == K2, "in_features mismatch"
    plan = make_plan(B, N, K, x.dtype)
    return linear_act_apply(x, prepare_weight(weight, plan),
                            prepare_bias(bias, plan), plan,
                            act=act, approx_gelu=approx_gelu)


if __name__ == "__main__":
    key = jax.random.PRNGKey(0)

    # ---- LinearAct shapes: batch=8, in_features=32, out_features=64, ReLU ----
    B, IN_F, OUT_F = 8, 32, 64
    kx, kw, kb = jax.random.split(key, 3)
    bound = 1.0 / (IN_F ** 0.5)           # nn.Linear default init range
    weight = jax.random.uniform(kw, (OUT_F, IN_F), jnp.float32, -bound, bound)
    bias = jax.random.uniform(kb, (OUT_F,), jnp.float32, -bound, bound)
    x = jax.random.normal(kx, (B, IN_F), jnp.float32)

    # One-time prep (as a model would do at init), then a jitted forward.
    plan = make_plan(B, OUT_F, IN_F, x.dtype)
    w_t = prepare_weight(weight, plan)
    b_row = prepare_bias(bias, plan)
    fwd = jax.jit(lambda xx, ww, bb: linear_act_apply(xx, ww, bb, plan, act="relu"))

    y = jax.block_until_ready(fwd(x, w_t, b_row))
    y_ref = jnp.maximum(x @ weight.T + bias, 0.0)
    assert y.shape == (B, OUT_F)
    assert jnp.allclose(y, y_ref, atol=1e-5, rtol=1e-5)

    # ---- bias=False + sigmoid path (no zeros bias allocated or DMA'd) ----
    y2 = jax.block_until_ready(linear_act(x, weight, None, act="sigmoid"))
    y2_ref = jax.nn.sigmoid(x @ weight.T)
    assert jnp.allclose(y2, y2_ref, atol=1e-5, rtol=1e-5)

    # ---- exercise the large-K reduction path (K > tk cap -> 3D grid + acc) ----
    B3, K3, N3 = 16, 1536, 256
    k1, k2, k3, k4 = jax.random.split(key, 4)
    w3 = jax.random.uniform(k1, (N3, K3), jnp.float32, -1.0 / K3 ** 0.5, 1.0 / K3 ** 0.5)
    b3 = jax.random.uniform(k2, (N3,), jnp.float32, -1.0 / K3 ** 0.5, 1.0 / K3 ** 0.5)
    x3 = jax.random.normal(k3, (B3, K3), jnp.float32)
    y3 = jax.block_until_ready(linear_act(x3, w3, b3, act="relu"))
    y3_ref = jnp.maximum(
        jnp.dot(x3, w3.T, precision=jax.lax.Precision.HIGHEST) + b3, 0.0)
    assert y3.shape == (B3, N3)
    assert jnp.allclose(y3, y3_ref, atol=1e-3, rtol=1e-3)

    print("KERNEL_OK")
</pallas_src>

<mosaic_0001>
module attributes {stable_mosaic.version = 11 : i64} {
  func.func @_fused_kernel(%arg0: i32, %arg1: i32, %arg2: memref<8x128xf32, #tpu.memory_space<vmem>>, %arg3: memref<128x128xf32, #tpu.memory_space<vmem>>, %arg4: memref<1x128xf32, #tpu.memory_space<vmem>>, %arg5: memref<8x128xf32, #tpu.memory_space<vmem>>) attributes {dimension_semantics = [#tpu.dimension_semantics<parallel>, #tpu.dimension_semantics<parallel>], iteration_bounds = array<i64: 1, 1>, scalar_prefetch = 0 : i64, scratch_operands = 0 : i64, tpu.core_type = #tpu.core_type<tc>, window_params = [{transform_indices = @transform_0, window_bounds = array<i64: 8, 128>}, {transform_indices = @transform_1, window_bounds = array<i64: 128, 128>}, {transform_indices = @transform_2, window_bounds = array<i64: 1, 128>}, {transform_indices = @transform_3, window_bounds = array<i64: 8, 128>}]} {
    %c0 = arith.constant 0 : index
    %c0_0 = arith.constant 0 : index
    %0 = vector.load %arg2[%c0, %c0_0] : memref<8x128xf32, #tpu.memory_space<vmem>>, vector<8x128xf32>
    %c0_1 = arith.constant 0 : index
    %c0_2 = arith.constant 0 : index
    %1 = vector.load %arg3[%c0_1, %c0_2] : memref<128x128xf32, #tpu.memory_space<vmem>>, vector<128x128xf32>
    %cst = arith.constant dense<0.000000e+00> : vector<8x128xf32>
    %2 = tpu.matmul %0, %1, %cst {dimension_numbers = #tpu.dot_dimension_numbers<[1], [0], [0], [1], [0, 0, 1, 1], [], []>} : vector<8x128xf32>, vector<128x128xf32>, vector<8x128xf32> -> vector<8x128xf32>
    %c0_3 = arith.constant 0 : index
    %c0_4 = arith.constant 0 : index
    %3 = vector.load %arg4[%c0_3, %c0_4] : memref<1x128xf32, #tpu.memory_space<vmem>>, vector<1x128xf32>
    %4 = vector.broadcast %3 : vector<1x128xf32> to vector<8x128xf32>
    %5 = arith.addf %2, %4 : vector<8x128xf32>
    %cst_5 = arith.constant 0.000000e+00 : f32
    %6 = vector.broadcast %cst_5 : f32 to vector<8x128xf32>
    %7 = arith.maximumf %5, %6 : vector<8x128xf32>
    %c0_6 = arith.constant 0 : index
    %c0_7 = arith.constant 0 : index
    %8 = vector.load %arg5[%c0_6, %c0_7] : memref<8x128xf32, #tpu.memory_space<vmem>>, vector<8x128xf32>
    tpu.vector_store %arg5[%c0_6, %c0_7], %7 {strides = array<i32>} : memref<8x128xf32, #tpu.memory_space<vmem>>, vector<8x128xf32>,
    return
  }
  func.func @transform_0(%arg0: i32, %arg1: i32) -> (i32, i32) {
    %c0_i32 = arith.constant 0 : i32
    %c0_i32_0 = arith.constant 0 : i32
    return %arg0, %c0_i32 : i32, i32
  }
  func.func @transform_1(%arg0: i32, %arg1: i32) -> (i32, i32) {
    %c0_i32 = arith.constant 0 : i32
    %c0_i32_0 = arith.constant 0 : i32
    return %c0_i32, %arg1 : i32, i32
  }
  func.func @transform_2(%arg0: i32, %arg1: i32) -> (i32, i32) {
    %c0_i32 = arith.constant 0 : i32
    %c0_i32_0 = arith.constant 0 : i32
    return %c0_i32, %arg1 : i32, i32
  }
  func.func @transform_3(%arg0: i32, %arg1: i32) -> (i32, i32) {
    %c0_i32 = arith.constant 0 : i32
    return %arg0, %arg1 : i32, i32
  }
}

</mosaic_0001>

<bundles_post_ra>
// kernel: _lambda_.1
= control target key start
LH: loop header
LB: loop body
LE: loop exit
PB: predicated region body
PF: predicated region fallthrough
CT: control target
= control target key end

     0   :  { %8 = vsyncpa [#allocation3], 0  ;;  %s184_s0 = inlined_call_operand.vmem [shape: f32[8,128], index: 0, kind: input, shape index: {}]   ;;  %s185_s1 = inlined_call_operand.hbm [shape: f32[128,128], index: 1, kind: input, shape index: {}]   ;;  %s186_s2 = inlined_call_operand.vmem [shape: f32[1,128], index: 2, kind: input, shape index: {}]   ;;  %s187_s3 = inlined_call_operand.hbm [shape: f32[8,128], index: 3, kind: output, shape index: {}]  }
   0x1   :  { %9 = vsyncpa [#allocation4], 0  ;;  %s16_s14 = sshll.u32 %s185_s1, 4  ;;  %s148_s15 = smov [#allocation2]   ;;  %s17_s14 = int_to_ptr.hbm [resolvable:$true] %s16_s14 }
   0x2   :  { %s18_s16 = sshll.u32 %s148_s15, 4  ;;  %s149_s17 = smov 128   ;;  %s19_s16 = int_to_ptr.vmem [resolvable:$true] %s18_s16 }
   0x3   :  { %s150_s18 = smov 8  }
   0x4   :  { %24 = dma.hbm_to_vmem [thread:$0]  %s17_s14, 2048, %s19_s16, [#allocation3], %s149_s17, %s149_s17, %s150_s18  }
   0x5   :  { %144 = dma.done.wait [#allocation3], 2048  }
   0x6   :  { %145 = vsyncadd [#allocation3], 4294965248  ;;  %v47_v0 = vld [vmem:[#allocation2 + $0x78] sm:$0xff]  ;;  %v46_v1 = vld [vmem:[#allocation2 + $0x70] sm:$0xff]  ;;  %s151_s22 = smov [#allocation5]   ;;  %s81_s26 = sshll.u32 %s187_s3, 4  ;;  %s82_s26 = int_to_ptr.hbm [resolvable:$true] %s81_s26 }
   0x7   :  { %52 = vmatpush.msra.mxu0 %v47_v0  ;;  %v45_v2 = vld [vmem:[#allocation2 + $0x68] sm:$0xff]  ;;  %v44_v3 = vld [vmem:[#allocation2 + $0x60] sm:$0xff]  ;;  %v43_v4 = vld [vmem:[#allocation2 + $0x58] sm:$0xff]  ;;  %s79_s23 = sshll.u32 %s151_s22, 4  ;;  %s80_s23 = int_to_ptr.vmem [resolvable:$true] %s79_s23 }
   0x8   :  { %v42_v5 = vld [vmem:[#allocation2 + $0x50] sm:$0xff]  ;;  %v41_v6 = vld [vmem:[#allocation2 + $0x48] sm:$0xff]  ;;  %v40_v7 = vld [vmem:[#allocation2 + $0x40] sm:$0xff] }
   0x9   :  { %53 = vmatpush.msra.mxu0 %v46_v1  ;;  %v39_v8 = vld [vmem:[#allocation2 + $0x38] sm:$0xff]  ;;  %v38_v9 = vld [vmem:[#allocation2 + $0x30] sm:$0xff]  ;;  %v37_v10 = vld [vmem:[#allocation2 + $0x28] sm:$0xff] }
   0xa   :  { %v36_v11 = vld [vmem:[#allocation2 + $0x20] sm:$0xff]  ;;  %v35_v12 = vld [vmem:[#allocation2 + $0x18] sm:$0xff]  ;;  %v34_v13 = vld [vmem:[#allocation2 + $0x10] sm:$0xff] }
   0xb   :  { %54 = vmatpush.msra.mxu0 %v45_v2  ;;  %v33_v14 = vld [vmem:[#allocation2 + $0x8] sm:$0xff]  ;;  %v32_v15 = vld [vmem:[#allocation2] sm:$0xff] }
   0xc   :  { %v31_v16 = vld [vmem:[%s184_s0] sm:$0xff] }
   0xd   :  { %55 = vmatpush.msra.mxu0 %v44_v3  ;;  %v95_v17 = vld [vmem:[%s186_s2] ss:$0 sm:$0xff] }
   0xf   :  { %56 = vmatpush.msra.mxu0 %v43_v4 }
  0x11   :  { %57 = vmatpush.msra.mxu0 %v42_v5 }
  0x13   :  { %58 = vmatpush.msra.mxu0 %v41_v6 }
  0x15   :  { %59 = vmatpush.msra.mxu0 %v40_v7 }
  0x17   :  { %60 = vmatpush.msra.mxu0 %v39_v8 }
  0x19   :  { %61 = vmatpush.msra.mxu0 %v38_v9 }
  0x1b   :  { %62 = vmatpush.msra.mxu0 %v37_v10 }
  0x1d   :  { %63 = vmatpush.msra.mxu0 %v36_v11 }
  0x1f   :  { %64 = vmatpush.msra.mxu0 %v35_v12 }
  0x21   :  { %65 = vmatpush.msra.mxu0 %v34_v13 }
  0x23   :  { %66 = vmatpush.msra.mxu0 %v33_v14 }
  0x25   :  { %67 = vmatpush.msra.mxu0 %v32_v15 }
  0x26   :  { %68 = vmatmul.f32.vlgmr.msra.gmra.mxu0 %v31_v16 }
  0xa3   :  { %v69_v18 = vpop.f32.mrf.mxu0 }
  0xa4   :  { %v70_v19 = vadd.f32 %v95_v17, %v69_v18 }
  0xa6   :  { %v72_v20 = vmax.f32 %v70_v19, 0.0 }
  0xa8   :  { %73 = vst [vmem:[#allocation5] sm:$0xff] %v72_v20 }
  0xa9   :  { %84 = dma.vmem_to_hbm [thread:$0]  %s80_s23, 128, %s82_s26, [#allocation4]  }
  0xaa   :  { %146 = dma.done.wait [#allocation4], 128  }
  0xab   :  { %147 = vsyncadd [#allocation4], 4294967168 }
  0xac   :  { %89 = vsyncpa [#allocation3], 1 }
  0xad   :  { %90 = vsyncpa [#allocation4], 1 }

</bundles_post_ra>
